<compile_context>
chip_gen: v7x
topology: tpu7x:2x2x1
jax: 0.10.0
libtpu: 0.0.40
codegen_flags: <defaults>
</compile_context>

<pallas_src>
import functools
import math

import jax
import jax.numpy as jnp
from jax.experimental import pallas as pl
from jax.experimental.pallas import tpu as pltpu


def _round_up(x, m):
    return ((x + m - 1) // m) * m


def _conv_matmul_kernel(cols_ref, w_ref, b_ref, o_ref, acc_ref, *, apply_relu):
    """One (row-tile, k-tile) grid step of the im2col matmul.

    cols_ref: (tm, tk)      im2col'd activations (zero-padded to alignment)
    w_ref:    (tk, Cp)      weight slab for this k-tile (lane-dense Cp)
    b_ref:    (1,  Cp)      bias (zero-padded, f32)
    o_ref:    (tm, Cp)      output row tile (written only on the last k step)
    acc_ref:  (tm, Cp) f32  VMEM accumulator, persists across the k axis
    """
    k = pl.program_id(1)

    @pl.when(k == 0)
    def _():
        acc_ref[...] = jnp.zeros_like(acc_ref)

    acc_ref[...] += jnp.dot(cols_ref[...], w_ref[...],
                            preferred_element_type=jnp.float32)

    @pl.when(k == pl.num_programs(1) - 1)
    def _():
        out = acc_ref[...] + b_ref[...]
        if apply_relu:
            out = jnp.maximum(out, 0.0)
        o_ref[...] = out.astype(o_ref.dtype)


def conv1d_same_pallas(x, weight, bias, *, stride=1, dilation=1,
                       apply_relu=True, tm_max=512, tk_max=2048,
                       compute_dtype=None):
    """x: (N, C_in, L) float32, weight: (C_out, C_in, K), bias: (C_out,) or None.

    Reproduces conv1d_same_padding(...) (+ optional ReLU) from the PyTorch
    reference exactly (odd "SAME" pad goes to the right).
    """
    N, C_in, L = x.shape
    C_out, C_in_w, K = weight.shape
    assert C_in_w == C_in

    # --- TF-"SAME" padding arithmetic (matches the PyTorch reference) -------
    out_rows = -(-L // stride)                                   # ceil(L/stride)
    pad_total = max(0, (out_rows - 1) * stride + (K - 1) * dilation + 1 - L)
    pad_left = pad_total // 2
    pad_right = pad_total - pad_left                             # odd extra -> right
    x_p = jnp.pad(x, ((0, 0), (0, 0), (pad_left, pad_right)))
    L_out = (L + pad_total - dilation * (K - 1) - 1) // stride + 1

    # --- im2col (pure data movement, kept in JAX glue) ----------------------
    idx = (jnp.arange(L_out) * stride)[:, None] + jnp.arange(K)[None, :] * dilation
    cols = x_p[:, :, idx]                                        # (N, C_in, L_out, K)
    cols = jnp.transpose(cols, (0, 2, 3, 1)).reshape(N * L_out, K * C_in)
    w_mat = jnp.transpose(weight, (2, 1, 0)).reshape(K * C_in, C_out)

    # --- alignment / tiling --------------------------------------------------
    M = N * L_out
    KC = K * C_in
    Cp = _round_up(C_out, 128)                       # lane-dense output width

    # Row tile: large, multiple of 128 (MXU systolic width), capped at tm_max.
    tm = min(tm_max, _round_up(M, 128))
    M_pad = _round_up(M, tm)
    n_rows = M_pad // tm
    if n_rows > 1 and n_rows % 2:                    # balance 2 TCs on v7x
        M_pad += tm
        n_rows += 1

    # Reduction tile: multiple of 128; cap so the double-buffered weight slab
    # (tk x Cp f32, x2) stays <= ~16 MiB for the v7x 64 MiB VMEM budget.
    tk_cap = max(128, ((8 * 2**20) // (Cp * 4)) // 128 * 128)
    tk_eff_max = max(128, min(tk_max, tk_cap))
    KC_128 = _round_up(KC, 128)
    n_k = -(-KC_128 // tk_eff_max)
    tk = _round_up(-(-KC_128 // n_k), 128)
    KC_pad = tk * n_k

    dt = compute_dtype or x.dtype
    cols = jnp.pad(cols, ((0, M_pad - M), (0, KC_pad - KC))).astype(dt)
    w_mat = jnp.pad(w_mat, ((0, KC_pad - KC), (0, Cp - C_out))).astype(dt)
    if bias is None:
        b = jnp.zeros((1, Cp), jnp.float32)
    else:
        b = jnp.pad(bias.astype(jnp.float32).reshape(1, C_out),
                    ((0, 0), (0, Cp - C_out)))

    itm = jnp.dtype(dt).itemsize
    cost = pl.CostEstimate(
        flops=2 * M_pad * KC_pad * Cp,
        transcendentals=0,
        bytes_accessed=(M_pad * KC_pad * itm            # cols streamed once
                        + n_rows * KC_pad * Cp * itm    # weights re-streamed per row tile
                        + M_pad * Cp * jnp.dtype(x.dtype).itemsize),
    )

    out = pl.pallas_call(
        functools.partial(_conv_matmul_kernel, apply_relu=apply_relu),
        out_shape=jax.ShapeDtypeStruct((M_pad, Cp), x.dtype),
        grid_spec=pltpu.PrefetchScalarGridSpec(
            num_scalar_prefetch=0,
            grid=(n_rows, n_k),
            in_specs=[
                pl.BlockSpec((tm, tk), lambda i, k: (i, k)),     # cols
                pl.BlockSpec((tk, Cp), lambda i, k: (k, 0)),     # weights
                pl.BlockSpec((1, Cp), lambda i, k: (0, 0)),      # bias
            ],
            out_specs=pl.BlockSpec((tm, Cp), lambda i, k: (i, 0)),
            scratch_shapes=[pltpu.VMEM((tm, Cp), jnp.float32)],
        ),
        compiler_params=pltpu.CompilerParams(
            dimension_semantics=("parallel", "arbitrary"),
            vmem_limit_bytes=48 * 1024 * 1024,
        ),
        cost_estimate=cost,
    )(cols, w_mat, b)

    out = out[:M, :C_out].reshape(N, L_out, C_out)
    return jnp.transpose(out, (0, 2, 1))                         # (N, C_out, L_out)


class Conv1DPaddingSame:
    """JAX/Pallas port of the PyTorch Conv1DPaddingSame module."""

    def __init__(self, ch_in, filters, kernel_size, strides, padding,
                 dilation=1, use_bias=True, use_activation=True, key=None):
        assert padding == 'SAME', 'Only same padding is supported'
        self.stride = strides
        self.dilation = dilation
        self.use_bias = use_bias
        self.use_activation = use_activation
        if key is None:
            key = jax.random.PRNGKey(0)
        k_w, k_b = jax.random.split(key)
        # Deterministic init mimicking nn.Conv1d default (uniform(-bound, bound)).
        bound = 1.0 / math.sqrt(ch_in * kernel_size)
        self.weight = jax.random.uniform(
            k_w, (filters, ch_in, kernel_size), jnp.float32, -bound, bound)
        self.bias = (jax.random.uniform(k_b, (filters,), jnp.float32, -bound, bound)
                     if use_bias else None)

    def __call__(self, x, activation=True):
        return conv1d_same_pallas(
            x, self.weight, self.bias,
            stride=self.stride, dilation=self.dilation,
            apply_relu=(self.use_activation and activation))


def _reference_conv(x, weight, bias, stride, dilation, apply_relu):
    """Pure-JAX reference (lax conv) replicating the PyTorch semantics."""
    N, C_in, L = x.shape
    C_out, _, K = weight.shape
    out_rows = -(-L // stride)
    pad_total = max(0, (out_rows - 1) * stride + (K - 1) * dilation + 1 - L)
    pad_left = pad_total // 2
    pad_right = pad_total - pad_left
    y = jax.lax.conv_general_dilated(
        x, weight, window_strides=(stride,),
        padding=[(pad_left, pad_right)],
        rhs_dilation=(dilation,),
        dimension_numbers=('NCH', 'OIH', 'NCH'))
    if bias is not None:
        y = y + bias[None, :, None]
    if apply_relu:
        y = jnp.maximum(y, 0.0)
    return y


if __name__ == "__main__":
    key = jax.random.PRNGKey(0)
    k_x, k_m = jax.random.split(key)

    N, C_in, L = 2, 4, 16
    filters, kernel_size, stride, dilation = 8, 5, 2, 1

    x = jax.random.normal(k_x, (N, C_in, L), jnp.float32)
    module = Conv1DPaddingSame(C_in, filters, kernel_size, stride, 'SAME',
                               dilation=dilation, use_bias=True,
                               use_activation=True, key=k_m)

    out = module(x)
    out = jax.block_until_ready(out)

    ref = _reference_conv(x, module.weight, module.bias, stride, dilation, True)
    assert out.shape == (N, filters, -(-L // stride)), out.shape
    assert jnp.allclose(out, ref, atol=1e-5, rtol=1e-5), "mismatch vs reference"

    print("KERNEL_OK")
</pallas_src>

<mosaic_0001>
module attributes {stable_mosaic.version = 11 : i64} {
  func.func @_conv_matmul_kernel(%arg0: i32, %arg1: i32, %arg2: memref<128x128xf32, #tpu.memory_space<vmem>>, %arg3: memref<128x128xf32, #tpu.memory_space<vmem>>, %arg4: memref<1x128xf32, #tpu.memory_space<vmem>>, %arg5: memref<128x128xf32, #tpu.memory_space<vmem>>, %arg6: memref<128x128xf32, #tpu.memory_space<vmem>>) attributes {dimension_semantics = [#tpu.dimension_semantics<parallel>, #tpu.dimension_semantics<arbitrary>], iteration_bounds = array<i64: 1, 1>, scalar_prefetch = 0 : i64, scratch_operands = 1 : i64, tpu.core_type = #tpu.core_type<tc>, window_params = [{transform_indices = @transform_0, window_bounds = array<i64: 128, 128>}, {transform_indices = @transform_1, window_bounds = array<i64: 128, 128>}, {pipeline_mode = #tpu.pipeline_mode<synchronous>, transform_indices = @transform_2, window_bounds = array<i64: 1, 128>}, {transform_indices = @transform_3, window_bounds = array<i64: 128, 128>}]} {
    %c0_i32 = arith.constant 0 : i32
    %0 = arith.cmpi eq, %arg1, %c0_i32 : i32
    %1 = arith.extui %0 : i1 to i32
    %c0_i32_0 = arith.constant 0 : i32
    %2 = arith.cmpi ne, %1, %c0_i32_0 : i32
    scf.if %2 {
      %cst_10 = arith.constant 0.000000e+00 : f32
      %12 = vector.broadcast %cst_10 : f32 to vector<128x128xf32>
      %c0_11 = arith.constant 0 : index
      %c0_12 = arith.constant 0 : index
      %13 = vector.load %arg6[%c0_11, %c0_12] : memref<128x128xf32, #tpu.memory_space<vmem>>, vector<128x128xf32>
      tpu.vector_store %arg6[%c0_11, %c0_12], %12 {strides = array<i32>} : memref<128x128xf32, #tpu.memory_space<vmem>>, vector<128x128xf32>,
    } else {
    }
    %c0 = arith.constant 0 : index
    %c0_1 = arith.constant 0 : index
    %3 = vector.load %arg6[%c0, %c0_1] : memref<128x128xf32, #tpu.memory_space<vmem>>, vector<128x128xf32>
    %c0_2 = arith.constant 0 : index
    %c0_3 = arith.constant 0 : index
    %4 = vector.load %arg2[%c0_2, %c0_3] : memref<128x128xf32, #tpu.memory_space<vmem>>, vector<128x128xf32>
    %c0_4 = arith.constant 0 : index
    %c0_5 = arith.constant 0 : index
    %5 = vector.load %arg3[%c0_4, %c0_5] : memref<128x128xf32, #tpu.memory_space<vmem>>, vector<128x128xf32>
    %cst = arith.constant dense<0.000000e+00> : vector<128x128xf32>
    %6 = tpu.matmul %4, %5, %cst {dimension_numbers = #tpu.dot_dimension_numbers<[1], [0], [0], [1], [0, 0, 1, 1], [], []>} : vector<128x128xf32>, vector<128x128xf32>, vector<128x128xf32> -> vector<128x128xf32>
    %7 = arith.addf %3, %6 : vector<128x128xf32>
    %c0_6 = arith.constant 0 : index
    %c0_7 = arith.constant 0 : index
    %8 = vector.load %arg6[%c0_6, %c0_7] : memref<128x128xf32, #tpu.memory_space<vmem>>, vector<128x128xf32>
    tpu.vector_store %arg6[%c0_6, %c0_7], %7 {strides = array<i32>} : memref<128x128xf32, #tpu.memory_space<vmem>>, vector<128x128xf32>,
    %c0_i32_8 = arith.constant 0 : i32
    %9 = arith.cmpi eq, %arg1, %c0_i32_8 : i32
    %10 = arith.extui %9 : i1 to i32
    %c0_i32_9 = arith.constant 0 : i32
    %11 = arith.cmpi ne, %10, %c0_i32_9 : i32
    scf.if %11 {
      %c0_10 = arith.constant 0 : index
      %c0_11 = arith.constant 0 : index
      %12 = vector.load %arg6[%c0_10, %c0_11] : memref<128x128xf32, #tpu.memory_space<vmem>>, vector<128x128xf32>
      %c0_12 = arith.constant 0 : index
      %c0_13 = arith.constant 0 : index
      %13 = vector.load %arg4[%c0_12, %c0_13] : memref<1x128xf32, #tpu.memory_space<vmem>>, vector<1x128xf32>
      %14 = vector.broadcast %13 : vector<1x128xf32> to vector<128x128xf32>
      %15 = arith.addf %12, %14 : vector<128x128xf32>
      %cst_14 = arith.constant 0.000000e+00 : f32
      %16 = vector.broadcast %cst_14 : f32 to vector<128x128xf32>
      %17 = arith.maximumf %15, %16 : vector<128x128xf32>
      %c0_15 = arith.constant 0 : index
      %c0_16 = arith.constant 0 : index
      %18 = vector.load %arg5[%c0_15, %c0_16] : memref<128x128xf32, #tpu.memory_space<vmem>>, vector<128x128xf32>
      tpu.vector_store %arg5[%c0_15, %c0_16], %17 {strides = array<i32>} : memref<128x128xf32, #tpu.memory_space<vmem>>, vector<128x128xf32>,
    } else {
    }
    return
  }
  func.func @transform_0(%arg0: i32, %arg1: i32) -> (i32, i32) {
    %c0_i32 = arith.constant 0 : i32
    return %arg0, %arg1 : i32, i32
  }
  func.func @transform_1(%arg0: i32, %arg1: i32) -> (i32, i32) {
    %c0_i32 = arith.constant 0 : i32
    %c0_i32_0 = arith.constant 0 : i32
    return %arg1, %c0_i32 : i32, i32
  }
  func.func @transform_2(%arg0: i32, %arg1: i32) -> (i32, i32) {
    %c0_i32 = arith.constant 0 : i32
    %c0_i32_0 = arith.constant 0 : i32
    %c0_i32_1 = arith.constant 0 : i32
    return %c0_i32, %c0_i32_0 : i32, i32
  }
  func.func @transform_3(%arg0: i32, %arg1: i32) -> (i32, i32) {
    %c0_i32 = arith.constant 0 : i32
    %c0_i32_0 = arith.constant 0 : i32
    return %arg0, %c0_i32 : i32, i32
  }
}

</mosaic_0001>

<bundles_post_ra>
// kernel: tpu_custom_call.1
= control target key start
LH: loop header
LB: loop body
LE: loop exit
PB: predicated region body
PF: predicated region fallthrough
CT: control target
= control target key end

     0   :  { %8 = vsyncpa [#allocation4], 0  ;;  %s667_s0 = inlined_call_operand.hbm [shape: f32[128,128], index: 0, kind: input, shape index: {}]   ;;  %s668_s1 = inlined_call_operand.hbm [shape: f32[128,128], index: 1, kind: input, shape index: {}]   ;;  %s669_s2 = inlined_call_operand.vmem [shape: f32[1,128], index: 2, kind: input, shape index: {}]   ;;  %s670_s3 = inlined_call_operand.hbm [shape: f32[128,128], index: 3, kind: output, shape index: {}]  }
   0x1   :  { %9 = vsyncpa [#allocation7], 0 }
   0x2   :  { %10 = vsyncpa [#allocation5], 0  ;;  %s594_s12 = smov [#allocation3]   ;;  %s522_s16 = scalar_lea.hbm %s667_s0, 2048 }
   0x3   :  { %s16_s13 = sshll.u32 %s594_s12, 4  ;;  %p523_p0 = scmp.ne.s32.totalorder %s667_s0, %s522_s16  ;;  %s17_s13 = int_to_ptr.vmem [resolvable:$true] %s16_s13 }
   0x4   :  { %p526_p1 = scmp.lt.u32.totalorder %s522_s16, %s667_s0 }
   0x6   :  { %p528_p2 = pnand %p526_p1, %p523_p0 }
   0x8   :  { %531 = shalt.err (!%p528_p2)
}
   0x9   :  { %s532_s21 = scalar_lea.vmem %s17_s13, 2048  ;;  %p537_p4 = scmp.lt.s32.totalorder %s17_s13, %s17_s13 }
   0xa   :  { %p533_p3 = scmp.ne.s32.totalorder %s17_s13, %s532_s21  ;;  %p538_p5 = scmp.lt.s32.totalorder %s532_s21, %s532_s21 }
   0xc   :  { %p539_p6 = por %p538_p5, %p537_p4 }
   0xe   :  { %p540_p7 = pnand %p539_p6, %p533_p3 }
  0x10   :  { %543 = shalt.err (!%p540_p7)
}
  0x11   :  { %s595_s22 = smov 128   ;;  %s596_s23 = smov 8  }
  0x12   :  { %22 = dma.hbm_to_vmem [thread:$0]  %s667_s0, 2048, %s17_s13, [#allocation4], %s595_s22, %s595_s22, %s596_s23  }
  0x13   :  { %s597_s26 = smov [#allocation6]   ;;  %s544_s30 = scalar_lea.hbm %s668_s1, 2048 }
  0x14   :  { %s28_s27 = sshll.u32 %s597_s26, 4  ;;  %p545_p8 = scmp.ne.s32.totalorder %s668_s1, %s544_s30  ;;  %s29_s27 = int_to_ptr.vmem [resolvable:$true] %s28_s27 }
  0x15   :  { %p548_p9 = scmp.lt.u32.totalorder %s544_s30, %s668_s1 }
  0x17   :  { %p550_p10 = pnand %p548_p9, %p545_p8 }
  0x19   :  { %553 = shalt.err (!%p550_p10)
}
  0x1a   :  { %s554_s8 = scalar_lea.vmem %s29_s27, 2048  ;;  %p559_p12 = scmp.lt.s32.totalorder %s29_s27, %s29_s27 }
  0x1b   :  { %p555_p11 = scmp.ne.s32.totalorder %s29_s27, %s554_s8  ;;  %p560_p13 = scmp.lt.s32.totalorder %s554_s8, %s554_s8 }
  0x1d   :  { %p561_p0 = por %p560_p13, %p559_p12 }
  0x1f   :  { %p562_p1 = pnand %p561_p0, %p555_p11 }
  0x21   :  { %565 = shalt.err (!%p562_p1)
}
  0x22   :  { %34 = dma.hbm_to_vmem [thread:$0]  %s668_s1, 2048, %s29_s27, [#allocation7], %s595_s22, %s595_s22, %s596_s23  }
  0x23   :  { %588 = dma.done.wait [#allocation4], 2048  }
  0x24   :  { %589 = vsyncadd [#allocation4], 4294965248 }
  0x25   :  { %590 = dma.done.wait [#allocation7], 2048  }
  0x26   :  { %591 = vsyncadd [#allocation7], 4294965248  ;;  %v95_v0 = vld [vmem:[#allocation6] sm:$0xff]  ;;  %v96_v1 = vld [vmem:[#allocation6 + $0x8] sm:$0xff] }
  0x27   :  { %v97_v2 = vld [vmem:[#allocation6 + $0x10] sm:$0xff]  ;;  %v469_v3 = vpack.c.bf16 %v96_v1, %v95_v0  ;;  %v98_v4 = vld [vmem:[#allocation6 + $0x18] sm:$0xff]  ;;  %v99_v6 = vld [vmem:[#allocation6 + $0x20] sm:$0xff] }
  0x28   :  { %v473_v5 = vpack.c.bf16 %v98_v4, %v97_v2  ;;  %v100_v7 = vld [vmem:[#allocation6 + $0x28] sm:$0xff]  ;;  %v79_v9 = vld [vmem:[#allocation3] sm:$0xff]  ;;  %v101_v11 = vld [vmem:[#allocation6 + $0x30] sm:$0xff] }
  0x29   :  { %470 = vmatprep.subr.bf16.mxu0 %v469_v3  ;;  %501 = vmatprep.subr.bf16.mxu1 %v469_v3  ;;  %v477_v8 = vpack.c.bf16 %v100_v7, %v99_v6  ;;  %v87_v10 = vld [vmem:[#allocation3 + $0x40] sm:$0xff]  ;;  %v102_v12 = vld [vmem:[#allocation6 + $0x38] sm:$0xff]  ;;  %v104_v15 = vld [vmem:[#allocation6 + $0x48] sm:$0xff] }
  0x2a   :  { %472 = vmatpush3.bf16.msra.mxu0 %v469_v3  ;;  %509 = vmatpush3.bf16.msra.mxu1 %v469_v3  ;;  %v481_v13 = vpack.c.bf16 %v102_v12, %v101_v11  ;;  %v103_v14 = vld [vmem:[#allocation6 + $0x40] sm:$0xff]  ;;  %v105_v17 = vld [vmem:[#allocation6 + $0x50] sm:$0xff]  ;;  %v106_v18 = vld [vmem:[#allocation6 + $0x58] sm:$0xff] }
  0x2b   :  { %474 = vmatprep.subr.bf16.mxu0 %v473_v5  ;;  %502 = vmatprep.subr.bf16.mxu1 %v473_v5  ;;  %v485_v16 = vpack.c.bf16 %v104_v15, %v103_v14  ;;  %v489_v19 = vpack.c.bf16 %v106_v18, %v105_v17  ;;  %v107_v20 = vld [vmem:[#allocation6 + $0x60] sm:$0xff]  ;;  %v108_v21 = vld [vmem:[#allocation6 + $0x68] sm:$0xff]  ;;  %v109_v23 = vld [vmem:[#allocation6 + $0x70] sm:$0xff] }
  0x2c   :  { %445 = vmatprep.mubr.f32.mxu0 %v79_v9  ;;  %457 = vmatprep.mubr.f32.mxu1 %v87_v10  ;;  %v493_v22 = vpack.c.bf16 %v108_v21, %v107_v20  ;;  %v110_v24 = vld [vmem:[#allocation6 + $0x78] sm:$0xff]  ;;  %v80_v26 = vld [vmem:[#allocation3 + $0x8] sm:$0xff]  ;;  %v81_v28 = vld [vmem:[#allocation3 + $0x10] sm:$0xff] }
  0x2d   :  { %v497_v25 = vpack.c.bf16 %v110_v24, %v109_v23  ;;  %v88_v27 = vld [vmem:[#allocation3 + $0x48] sm:$0xff]  ;;  %v89_v29 = vld [vmem:[#allocation3 + $0x50] sm:$0xff]  ;;  %v82_v30 = vld [vmem:[#allocation3 + $0x18] sm:$0xff] }
  0x2e   :  { %476 = vmatpush3.bf16.msra.mxu0 %v473_v5  ;;  %510 = vmatpush3.bf16.msra.mxu1 %v473_v5  ;;  %v90_v31 = vld [vmem:[#allocation3 + $0x58] sm:$0xff]  ;;  %v83_v32 = vld [vmem:[#allocation3 + $0x20] sm:$0xff]  ;;  %v84_v34 = vld [vmem:[#allocation3 + $0x28] sm:$0xff] }
  0x2f   :  { %478 = vmatprep.subr.bf16.mxu0 %v477_v8  ;;  %503 = vmatprep.subr.bf16.mxu1 %v477_v8  ;;  %v91_v33 = vld [vmem:[#allocation3 + $0x60] sm:$0xff]  ;;  %v92_v35 = vld [vmem:[#allocation3 + $0x68] sm:$0xff]  ;;  %v85_v36 = vld [vmem:[#allocation3 + $0x30] sm:$0xff] }
  0x30   :  { %v93_v37 = vld [vmem:[#allocation3 + $0x70] sm:$0xff]  ;;  %v86_v38 = vld [vmem:[#allocation3 + $0x38] sm:$0xff]  ;;  %v380_v40 = vld [vmem:[%s669_s2] ss:$0 sm:$0xff]  ;;  %s598_s2 = smov [#allocation8]  }
  0x31   :  { %v94_v39 = vld [vmem:[#allocation3 + $0x78] sm:$0xff]  ;;  %s367_s11 = sshll.u32 %s598_s2, 4  ;;  %s368_s11 = int_to_ptr.vmem [resolvable:$true] %s367_s11 }
  0x32   :  { %480 = vmatpush3.bf16.msra.mxu0 %v477_v8  ;;  %511 = vmatpush3.bf16.msra.mxu1 %v477_v8  ;;  %s566_s12 = scalar_lea.vmem %s368_s11, 2048  ;;  %p571_p3 = scmp.lt.s32.totalorder %s368_s11, %s368_s11 }
  0x33   :  { %482 = vmatprep.subr.bf16.mxu0 %v481_v13  ;;  %504 = vmatprep.subr.bf16.mxu1 %v481_v13  ;;  %p567_p2 = scmp.ne.s32.totalorder %s368_s11, %s566_s12  ;;  %p572_p4 = scmp.lt.s32.totalorder %s566_s12, %s566_s12 }
  0x35   :  { %p573_p5 = por %p572_p4, %p571_p3 }
  0x36   :  { %484 = vmatpush3.bf16.msra.mxu0 %v481_v13  ;;  %512 = vmatpush3.bf16.msra.mxu1 %v481_v13 }
  0x37   :  { %486 = vmatprep.subr.bf16.mxu0 %v485_v16  ;;  %505 = vmatprep.subr.bf16.mxu1 %v485_v16  ;;  %p574_p6 = pnand %p573_p5, %p567_p2 }
  0x3a   :  { %488 = vmatpush3.bf16.msra.mxu0 %v485_v16  ;;  %513 = vmatpush3.bf16.msra.mxu1 %v485_v16 }
  0x3b   :  { %490 = vmatprep.subr.bf16.mxu0 %v489_v19  ;;  %506 = vmatprep.subr.bf16.mxu1 %v489_v19 }
  0x3e   :  { %492 = vmatpush3.bf16.msra.mxu0 %v489_v19  ;;  %514 = vmatpush3.bf16.msra.mxu1 %v489_v19 }
  0x3f   :  { %494 = vmatprep.subr.bf16.mxu0 %v493_v22  ;;  %507 = vmatprep.subr.bf16.mxu1 %v493_v22 }
  0x42   :  { %496 = vmatpush3.bf16.msra.mxu0 %v493_v22  ;;  %515 = vmatpush3.bf16.msra.mxu1 %v493_v22 }
  0x43   :  { %498 = vmatprep.subr.bf16.mxu0 %v497_v25  ;;  %508 = vmatprep.subr.bf16.mxu1 %v497_v25 }
  0x46   :  { %500 = vmatpush3.bf16.msra.mxu0 %v497_v25  ;;  %516 = vmatpush3.bf16.msra.mxu1 %v497_v25 }
  0x49   :  { %446 = vmatmul.mubr.f32.vlgmr.msra.gmra.mrb[0].mxu0 %v80_v26  ;;  %458 = vmatmul.mubr.f32.vlgmr.msra.gmra.mrb[0].mxu1 %v88_v27 }
  0x4a   :  { %448 = vmatprep.mubr.f32.mxu0 %v81_v28  ;;  %460 = vmatprep.mubr.f32.mxu1 %v89_v29 }
  0x4d   :  { %449 = vmatmul.mubr.f32.gmra.mrb[2].mxu0 %v82_v30  ;;  %461 = vmatmul.mubr.f32.gmra.mrb[2].mxu1 %v90_v31 }
  0x4e   :  { %451 = vmatprep.mubr.f32.mxu0 %v83_v32  ;;  %463 = vmatprep.mubr.f32.mxu1 %v91_v33 }
  0x51   :  { %452 = vmatmul.mubr.f32.gmra.mrb[4].mxu0 %v84_v34  ;;  %464 = vmatmul.mubr.f32.gmra.mrb[4].mxu1 %v92_v35 }
  0x52   :  { %454 = vmatprep.mubr.f32.mxu0 %v85_v36  ;;  %466 = vmatprep.mubr.f32.mxu1 %v93_v37 }
  0x55   :  { %455 = vmatmul.mubr.f32.gmra.mrb[6].mxu0 %v86_v38  ;;  %467 = vmatmul.mubr.f32.gmra.mrb[6].mxu1 %v94_v39 }
 0x11c   :  { %v447_v41 = vpop.f32.mrb[0].mxu0  ;;  %v459_v42 = vpop.f32.mrb[0].mxu1 }
 0x11d   :  { %v315_v43 = vadd.f32 %v447_v41, %v380_v40  ;;  %v323_v44 = vadd.f32 %v459_v42, %v380_v40  ;;  %v177_v45 = vpop.f32.mrb[1].mxu0  ;;  %v217_v46 = vpop.f32.mrb[1].mxu1 }
 0x11e   :  { %v314_v47 = vadd.f32 %v380_v40, %v177_v45  ;;  %v322_v48 = vadd.f32 %v380_v40, %v217_v46 }
 0x11f   :  { %v331_v49 = vmax.f32 %v315_v43, 0.0  ;;  %v339_v50 = vmax.f32 %v323_v44, 0.0 }
 0x120   :  { %v330_v51 = vmax.f32 %v314_v47, 0.0  ;;  %v338_v52 = vmax.f32 %v322_v48, 0.0  ;;  %v450_v53 = vpop.f32.mrb[2].mxu0  ;;  %v462_v54 = vpop.f32.mrb[2].mxu1 }
 0x121   :  { %347 = vst [vmem:[#allocation8 + $0x8] sm:$0xff] %v331_v49  ;;  %355 = vst [vmem:[#allocation8 + $0x48] sm:$0xff] %v339_v50  ;;  %v317_v55 = vadd.f32 %v450_v53, %v380_v40  ;;  %v325_v56 = vadd.f32 %v462_v54, %v380_v40  ;;  %v187_v57 = vpop.f32.mrb[3].mxu0  ;;  %v227_v58 = vpop.f32.mrb[3].mxu1 }
 0x122   :  { %346 = vst [vmem:[#allocation8] sm:$0xff] %v330_v51  ;;  %354 = vst [vmem:[#allocation8 + $0x40] sm:$0xff] %v338_v52  ;;  %v316_v59 = vadd.f32 %v380_v40, %v187_v57  ;;  %v324_v60 = vadd.f32 %v380_v40, %v227_v58 }
 0x123   :  { %v333_v61 = vmax.f32 %v317_v55, 0.0  ;;  %v341_v62 = vmax.f32 %v325_v56, 0.0 }
 0x124   :  { %v332_v63 = vmax.f32 %v316_v59, 0.0  ;;  %v340_v0 = vmax.f32 %v324_v60, 0.0  ;;  %v453_v1 = vpop.f32.mrb[4].mxu0  ;;  %v465_v2 = vpop.f32.mrb[4].mxu1 }
 0x125   :  { %349 = vst [vmem:[#allocation8 + $0x18] sm:$0xff] %v333_v61  ;;  %357 = vst [vmem:[#allocation8 + $0x58] sm:$0xff] %v341_v62  ;;  %v319_v3 = vadd.f32 %v453_v1, %v380_v40  ;;  %v327_v4 = vadd.f32 %v465_v2, %v380_v40  ;;  %v197_v5 = vpop.f32.mrb[5].mxu0  ;;  %v237_v6 = vpop.f32.mrb[5].mxu1 }
 0x126   :  { %348 = vst [vmem:[#allocation8 + $0x10] sm:$0xff] %v332_v63  ;;  %356 = vst [vmem:[#allocation8 + $0x50] sm:$0xff] %v340_v0  ;;  %v318_v7 = vadd.f32 %v380_v40, %v197_v5  ;;  %v326_v8 = vadd.f32 %v380_v40, %v237_v6 }
 0x127   :  { %v335_v9 = vmax.f32 %v319_v3, 0.0  ;;  %v343_v10 = vmax.f32 %v327_v4, 0.0 }
 0x128   :  { %v334_v11 = vmax.f32 %v318_v7, 0.0  ;;  %v342_v12 = vmax.f32 %v326_v8, 0.0  ;;  %v456_v13 = vpop.f32.mrb[6].mxu0  ;;  %v468_v14 = vpop.f32.mrb[6].mxu1 }
 0x129   :  { %351 = vst [vmem:[#allocation8 + $0x28] sm:$0xff] %v335_v9  ;;  %359 = vst [vmem:[#allocation8 + $0x68] sm:$0xff] %v343_v10  ;;  %v321_v15 = vadd.f32 %v456_v13, %v380_v40  ;;  %v329_v16 = vadd.f32 %v468_v14, %v380_v40  ;;  %v207_v17 = vpop.f32.mrb[7].mxu0  ;;  %v247_v18 = vpop.f32.mrb[7].mxu1 }
 0x12a   :  { %350 = vst [vmem:[#allocation8 + $0x20] sm:$0xff] %v334_v11  ;;  %358 = vst [vmem:[#allocation8 + $0x60] sm:$0xff] %v342_v12  ;;  %v320_v19 = vadd.f32 %v380_v40, %v207_v17  ;;  %v328_v20 = vadd.f32 %v380_v40, %v247_v18 }
 0x12b   :  { %v337_v21 = vmax.f32 %v321_v15, 0.0  ;;  %v345_v22 = vmax.f32 %v329_v16, 0.0 }
 0x12c   :  { %v336_v23 = vmax.f32 %v320_v19, 0.0  ;;  %v344_v24 = vmax.f32 %v328_v20, 0.0 }
 0x12d   :  { %353 = vst [vmem:[#allocation8 + $0x38] sm:$0xff] %v337_v21  ;;  %361 = vst [vmem:[#allocation8 + $0x78] sm:$0xff] %v345_v22 }
 0x12e   :  { %352 = vst [vmem:[#allocation8 + $0x30] sm:$0xff] %v336_v23  ;;  %360 = vst [vmem:[#allocation8 + $0x70] sm:$0xff] %v344_v24 }
 0x12f   :  { %577 = shalt.err (!%p574_p6)
}
 0x130   :  { %s578_s15 = scalar_lea.hbm %s670_s3, 2048 }
 0x131   :  { %p579_p7 = scmp.ne.s32.totalorder %s670_s3, %s578_s15  ;;  %p582_p8 = scmp.lt.u32.totalorder %s578_s15, %s670_s3 }
 0x133   :  { %p584_p9 = pnand %p582_p8, %p579_p7 }
 0x135   :  { %587 = shalt.err (!%p584_p9)
}
 0x136   :  { %373 = dma.vmem_to_hbm [thread:$0]  %s368_s11, 2048, %s670_s3, [#allocation5], %s595_s22, %s595_s22, %s596_s23  }
 0x137   :  { %592 = dma.done.wait [#allocation5], 2048  }
 0x138   :  { %593 = vsyncadd [#allocation5], 4294965248 }
 0x139   :  { %377 = vsyncpa [#allocation4], 1 }
 0x13a   :  { %378 = vsyncpa [#allocation7], 1 }
 0x13b   :  { %379 = vsyncpa [#allocation5], 1 }

</bundles_post_ra>
